<compile_context>
chip_gen: v7x
topology: tpu7x:2x2x1
jax: 0.10.0
libtpu: 0.0.40
codegen_flags: <defaults>
</compile_context>

<pallas_src>
import functools

import jax
import jax.numpy as jnp
import numpy as np
from jax.experimental import pallas as pl
from jax.experimental.pallas import tpu as pltpu


def _round_up(x, m):
    return ((x + m - 1) // m) * m


def pointer_kernel(xd_ref, enc_ref, w2w_ref, rep_ref, vblk_ref, out_ref, *, bt, ne):
    # xd_ref   : (1, R, C)        decoder features, R = bt * Nd_padded
    # enc_ref  : (1, bt, Ne*C)    encoder projection, lane-flattened, f32
    # w2w_ref  : (C, Ne*C)        tile(W2^T, (1, Ne))
    # rep_ref  : (R, bt)          0/1 matrix repeating each encoder row over Nd_padded rows
    # vblk_ref : (Ne*C, Ne_pad)   kron(eye(Ne), v^T) zero-padded to lane-dense Ne_pad cols
    # out_ref  : (1, R, Ne_pad)   log-softmax scores (padded columns are garbage, sliced off)
    xd = xd_ref[0]                                                   # (R, C)
    enc = enc_ref[0]                                                 # (bt, Ne*C)

    # Decoder projection: batch folded into the MXU M dimension; weight pre-tiled along N
    # so the result is already laid out as (R, Ne*C) -> no lane-merging reshape needed.
    dec_wide = jnp.dot(xd, w2w_ref[...],
                       preferred_element_type=jnp.float32)           # (R, Ne*C)

    # Broadcast each encoder row over its decoder rows.
    if bt == 1:
        pre = dec_wide + enc                                         # (R, Ne*C) + (1, Ne*C)
    else:
        enc_rep = jnp.dot(rep_ref[...], enc,
                          preferred_element_type=jnp.float32)        # (R, Ne*C) on the MXU
        pre = dec_wide + enc_rep

    # Lane-dense tanh: last dim is Ne*C (>= 128) instead of C.
    t = jnp.tanh(pre)                                                # (R, Ne*C), f32

    # Channel contraction with v as an MXU matmul against the block-diagonal, lane-padded
    # v -> scores are produced directly in a lane-dense layout for the store.
    scores = jnp.dot(t, vblk_ref[...],
                     preferred_element_type=jnp.float32)             # (R, Ne_pad)

    # Mask padded encoder columns before the softmax statistics.
    if scores.shape[-1] != ne:
        col = jax.lax.broadcasted_iota(jnp.int32, scores.shape, 1)
        scores = jnp.where(col < ne, scores, jnp.float32(-1e30))

    # Numerically stable log_softmax over the encoder axis.
    m = jnp.max(scores, axis=-1, keepdims=True)
    s = scores - m
    lse = jnp.log(jnp.sum(jnp.exp(s), axis=-1, keepdims=True))
    out_ref[0] = s - lse


def pointer_network(x_decoder, x_encoder, w1, w2, v,
                    *, compute_dtype=jnp.float32, interpret=False):
    """x_decoder: (B, Nd, C), x_encoder: (B, Ne, C);
       w1, w2: (C, C) PyTorch Linear weights (out, in); v: (1, C)."""
    B, Nd, C = x_decoder.shape
    _, Ne, _ = x_encoder.shape
    f32 = jnp.float32
    in_dt = compute_dtype

    # ---- derived shapes --------------------------------------------------------------
    ndp = _round_up(Nd, 8)                 # sublane-aligned decoder rows
    ne_c = Ne * C                          # lane axis of the tanh intermediate
    ne_pad = _round_up(Ne, 128)            # lane-dense output columns

    # Batch rows folded into the MXU M dimension; keep >= 2 grid steps when B >= 2 so both
    # v7x TensorCores get work, and bound the per-step f32 intermediates for VMEM.
    target_rows = 256
    bt = max(1, target_rows // ndp)
    if B >= 2:
        bt = min(bt, (B + 1) // 2)
    bt = min(bt, B)
    vmem_budget = 40 * 1024 * 1024
    while bt > 1 and 6 * (bt * ndp) * ne_c * 4 > vmem_budget:
        bt -= 1
    bp = _round_up(B, bt)
    nblk = bp // bt
    R = bt * ndp

    # ---- wrapper-side preprocessing (plain XLA, derived weights / padding) ------------
    xd = jnp.zeros((bp, ndp, C), f32).at[:B, :Nd, :].set(x_decoder.astype(f32))
    xe = jnp.zeros((bp, Ne, C), f32).at[:B, :, :].set(x_encoder.astype(f32))

    # Encoder projection once per token via XLA; lane-flattened so the kernel's tanh and
    # stores are lane-dense.
    enc_wide = jnp.einsum("bec,oc->beo", xe.astype(in_dt), w1.astype(in_dt),
                          preferred_element_type=f32,
                          precision=jax.lax.Precision.HIGHEST
                          ).astype(f32).reshape(nblk, bt, ne_c)

    xd_blocks = xd.reshape(nblk, R, C).astype(in_dt)

    # Decoder weight tiled along N so xd @ w2w is already (R, Ne*C).
    w2w = jnp.tile(w2.T, (1, Ne)).astype(in_dt)                           # (C, Ne*C)
    # Block-diagonal v, zero-padded to a lane-dense number of output columns.
    vblk = jnp.zeros((ne_c, ne_pad), f32).at[:, :Ne].set(
        jnp.kron(jnp.eye(Ne, dtype=f32), v.astype(f32).T))                # (Ne*C, Ne_pad)
    # 0/1 matrix repeating each encoder row over its ndp decoder rows (used when bt > 1).
    rep = jnp.kron(jnp.eye(bt, dtype=f32), jnp.ones((ndp, 1), f32))       # (R, bt)

    # ---- VMEM budget sized from the actual (double-buffered) tiles --------------------
    isz = jnp.dtype(in_dt).itemsize
    vmem_bytes = 2 * (R * C * isz + bt * ne_c * 4 + R * ne_pad * 4)       # pipelined I/O
    vmem_bytes += C * ne_c * isz + ne_c * ne_pad * 4 + R * bt * 4         # resident weights
    vmem_bytes += 6 * R * ne_c * 4                                        # intermediates headroom
    vmem_limit = int(min(64 * 1024 * 1024, max(32 * 1024 * 1024, 2 * vmem_bytes)))

    kernel = functools.partial(pointer_kernel, bt=bt, ne=Ne)

    out = pl.pallas_call(
        kernel,
        out_shape=jax.ShapeDtypeStruct((nblk, R, ne_pad), f32),
        grid_spec=pltpu.PrefetchScalarGridSpec(
            num_scalar_prefetch=0,
            grid=(nblk,),
            in_specs=[
                pl.BlockSpec((1, R, C), lambda i: (i, 0, 0)),
                pl.BlockSpec((1, bt, ne_c), lambda i: (i, 0, 0)),
                pl.BlockSpec((C, ne_c), lambda i: (0, 0)),        # VMEM-resident weights:
                pl.BlockSpec((R, bt), lambda i: (0, 0)),          # constant index_map ->
                pl.BlockSpec((ne_c, ne_pad), lambda i: (0, 0)),   # no re-DMA per step
            ],
            out_specs=pl.BlockSpec((1, R, ne_pad), lambda i: (i, 0, 0)),
        ),
        compiler_params=pltpu.CompilerParams(
            dimension_semantics=("parallel",),
            vmem_limit_bytes=vmem_limit),
        interpret=interpret,
    )(xd_blocks, enc_wide, w2w, rep, vblk)

    # Un-pad: drop padded batches, decoder rows and lane-padding columns.
    return out.reshape(bp, ndp, ne_pad)[:B, :Nd, :Ne]


def pointer_network_ref(x_decoder, x_encoder, w1, w2, v):
    hp = jax.lax.Precision.HIGHEST
    enc_t = jnp.einsum("bec,oc->beo", x_encoder, w1, precision=hp)
    dec_t = jnp.einsum("bdc,oc->bdo", x_decoder, w2, precision=hp)
    t = jnp.tanh(enc_t[:, None, :, :] + dec_t[:, :, None, :])
    prod = jnp.einsum("bdec,c->bde", t, v[0], precision=hp)
    return jax.nn.log_softmax(prod, axis=-1)


if __name__ == "__main__":
    B, Nd, Ne, C = 2, 8, 8, 32  # n_hidden = 32

    key = jax.random.PRNGKey(0)
    k1, k2, k3, k4, k5 = jax.random.split(key, 5)

    x_decoder = jax.random.normal(k1, (B, Nd, C), dtype=jnp.float32)
    x_encoder = jax.random.normal(k2, (B, Ne, C), dtype=jnp.float32)

    # Deterministic parameter init (PyTorch Linear weight shapes: (out, in)).
    bound = 1.0 / np.sqrt(C)
    w1 = jax.random.uniform(k3, (C, C), jnp.float32, -bound, bound)
    w2 = jax.random.uniform(k4, (C, C), jnp.float32, -bound, bound)
    v = jax.random.uniform(k5, (1, C), jnp.float32, -bound, bound)

    ref = pointer_network_ref(x_decoder, x_encoder, w1, w2, v)

    # Full-precision path.
    out = jax.block_until_ready(pointer_network(x_decoder, x_encoder, w1, w2, v))
    np.testing.assert_allclose(np.asarray(out), np.asarray(ref), rtol=1e-4, atol=1e-4)

    # Mixed-precision path (bf16 MXU inputs, f32 tanh / softmax math) for v6e / v7x.
    out_bf16 = jax.block_until_ready(
        pointer_network(x_decoder, x_encoder, w1, w2, v, compute_dtype=jnp.bfloat16))
    np.testing.assert_allclose(np.asarray(out_bf16), np.asarray(ref), rtol=0.0, atol=1e-1)

    print("KERNEL_OK")
</pallas_src>

<mosaic_0001>
module attributes {stable_mosaic.version = 11 : i64} {
  func.func @pointer_kernel(%arg0: i32, %arg1: memref<1x8x32xf32, #tpu.memory_space<vmem>>, %arg2: memref<1x1x256xf32, #tpu.memory_space<vmem>>, %arg3: memref<32x256xf32, #tpu.memory_space<vmem>>, %arg4: memref<8x1xf32, #tpu.memory_space<vmem>>, %arg5: memref<256x128xf32, #tpu.memory_space<vmem>>, %arg6: memref<1x8x128xf32, #tpu.memory_space<vmem>>) attributes {dimension_semantics = [#tpu.dimension_semantics<parallel>], iteration_bounds = array<i64: 2>, scalar_prefetch = 0 : i64, scratch_operands = 0 : i64, tpu.core_type = #tpu.core_type<tc>, window_params = [{transform_indices = @transform_0, window_bounds = array<i64: 1, 8, 32>}, {transform_indices = @transform_1, window_bounds = array<i64: 1, 1, 256>}, {pipeline_mode = #tpu.pipeline_mode<synchronous>, transform_indices = @transform_2, window_bounds = array<i64: 32, 256>}, {pipeline_mode = #tpu.pipeline_mode<synchronous>, transform_indices = @transform_3, window_bounds = array<i64: 8, 1>}, {pipeline_mode = #tpu.pipeline_mode<synchronous>, transform_indices = @transform_4, window_bounds = array<i64: 256, 128>}, {transform_indices = @transform_5, window_bounds = array<i64: 1, 8, 128>}]} {
    %c0 = arith.constant 0 : index
    %c0_0 = arith.constant 0 : index
    %c0_1 = arith.constant 0 : index
    %0 = vector.load %arg1[%c0, %c0_0, %c0_1] : memref<1x8x32xf32, #tpu.memory_space<vmem>>, vector<1x8x32xf32>
    %1 = vector.shape_cast %0 : vector<1x8x32xf32> to vector<8x32xf32>
    %c0_2 = arith.constant 0 : index
    %c0_3 = arith.constant 0 : index
    %c0_4 = arith.constant 0 : index
    %2 = vector.load %arg2[%c0_2, %c0_3, %c0_4] : memref<1x1x256xf32, #tpu.memory_space<vmem>>, vector<1x1x256xf32>
    %3 = vector.shape_cast %2 : vector<1x1x256xf32> to vector<1x256xf32>
    %c0_5 = arith.constant 0 : index
    %c0_6 = arith.constant 0 : index
    %4 = vector.load %arg3[%c0_5, %c0_6] : memref<32x256xf32, #tpu.memory_space<vmem>>, vector<32x256xf32>
    %cst = arith.constant dense<0.000000e+00> : vector<8x256xf32>
    %5 = tpu.matmul %1, %4, %cst {dimension_numbers = #tpu.dot_dimension_numbers<[1], [0], [0], [1], [0, 0, 1, 1], [], []>} : vector<8x32xf32>, vector<32x256xf32>, vector<8x256xf32> -> vector<8x256xf32>
    %6 = vector.broadcast %3 : vector<1x256xf32> to vector<8x256xf32>
    %7 = arith.addf %5, %6 : vector<8x256xf32>
    %8 = math.tanh %7 : vector<8x256xf32>
    %c0_7 = arith.constant 0 : index
    %c0_8 = arith.constant 0 : index
    %9 = vector.load %arg5[%c0_7, %c0_8] : memref<256x128xf32, #tpu.memory_space<vmem>>, vector<256x128xf32>
    %cst_9 = arith.constant dense<0.000000e+00> : vector<8x128xf32>
    %10 = tpu.matmul %8, %9, %cst_9 {dimension_numbers = #tpu.dot_dimension_numbers<[1], [0], [0], [1], [0, 0, 1, 1], [], []>} : vector<8x256xf32>, vector<256x128xf32>, vector<8x128xf32> -> vector<8x128xf32>
    %11 = tpu.iota {dimensions = array<i32: 1>} : vector<8x128xi32>
    %c8_i32 = arith.constant 8 : i32
    %12 = vector.broadcast %c8_i32 : i32 to vector<8x128xi32>
    %13 = arith.cmpi slt, %11, %12 : vector<8x128xi32>
    %cst_10 = arith.constant -1.000000e+30 : f32
    %14 = vector.broadcast %cst_10 : f32 to vector<8x128xf32>
    %15 = arith.select %13, %10, %14 : vector<8x128xi1>, vector<8x128xf32>
    %cst_11 = arith.constant dense<0xFF800000> : vector<8xf32>
    %16 = vector.multi_reduction <maximumf>, %15, %cst_11 [1] : vector<8x128xf32> to vector<8xf32>
    %17 = vector.shape_cast %16 : vector<8xf32> to vector<8x1xf32>
    %18 = vector.broadcast %17 : vector<8x1xf32> to vector<8x128xf32>
    %19 = arith.subf %15, %18 : vector<8x128xf32>
    %20 = math.exp %19 : vector<8x128xf32>
    %cst_12 = arith.constant dense<0.000000e+00> : vector<8xf32>
    %21 = vector.multi_reduction <add>, %20, %cst_12 [1] : vector<8x128xf32> to vector<8xf32>
    %22 = vector.shape_cast %21 : vector<8xf32> to vector<8x1xf32>
    %23 = math.log %22 : vector<8x1xf32>
    %24 = vector.broadcast %23 : vector<8x1xf32> to vector<8x128xf32>
    %25 = arith.subf %19, %24 : vector<8x128xf32>
    %c0_13 = arith.constant 0 : index
    %c0_14 = arith.constant 0 : index
    %c0_15 = arith.constant 0 : index
    %26 = vector.load %arg6[%c0_13, %c0_14, %c0_15] : memref<1x8x128xf32, #tpu.memory_space<vmem>>, vector<1x8x128xf32>
    %27 = vector.shape_cast %26 : vector<1x8x128xf32> to vector<8x128xf32>
    %28 = vector.shape_cast %25 : vector<8x128xf32> to vector<1x8x128xf32>
    tpu.vector_store %arg6[%c0_13, %c0_14, %c0_15], %28 {strides = array<i32>} : memref<1x8x128xf32, #tpu.memory_space<vmem>>, vector<1x8x128xf32>,
    return
  }
  func.func @transform_0(%arg0: i32) -> (i32, i32, i32) {
    %c0_i32 = arith.constant 0 : i32
    %c0_i32_0 = arith.constant 0 : i32
    %c0_i32_1 = arith.constant 0 : i32
    return %arg0, %c0_i32, %c0_i32_0 : i32, i32, i32
  }
  func.func @transform_1(%arg0: i32) -> (i32, i32, i32) {
    %c0_i32 = arith.constant 0 : i32
    %c0_i32_0 = arith.constant 0 : i32
    %c0_i32_1 = arith.constant 0 : i32
    return %arg0, %c0_i32, %c0_i32_0 : i32, i32, i32
  }
  func.func @transform_2(%arg0: i32) -> (i32, i32) {
    %c0_i32 = arith.constant 0 : i32
    %c0_i32_0 = arith.constant 0 : i32
    %c0_i32_1 = arith.constant 0 : i32
    return %c0_i32, %c0_i32_0 : i32, i32
  }
  func.func @transform_3(%arg0: i32) -> (i32, i32) {
    %c0_i32 = arith.constant 0 : i32
    %c0_i32_0 = arith.constant 0 : i32
    %c0_i32_1 = arith.constant 0 : i32
    return %c0_i32, %c0_i32_0 : i32, i32
  }
  func.func @transform_4(%arg0: i32) -> (i32, i32) {
    %c0_i32 = arith.constant 0 : i32
    %c0_i32_0 = arith.constant 0 : i32
    %c0_i32_1 = arith.constant 0 : i32
    return %c0_i32, %c0_i32_0 : i32, i32
  }
  func.func @transform_5(%arg0: i32) -> (i32, i32, i32) {
    %c0_i32 = arith.constant 0 : i32
    %c0_i32_0 = arith.constant 0 : i32
    %c0_i32_1 = arith.constant 0 : i32
    return %arg0, %c0_i32, %c0_i32_0 : i32, i32, i32
  }
}

</mosaic_0001>

<bundles_post_ra>
// kernel: tpu_custom_call.1
= control target key start
LH: loop header
LB: loop body
LE: loop exit
PB: predicated region body
PF: predicated region fallthrough
CT: control target
= control target key end

     0   :  { %10 = vsyncpa [#allocation3], 0  ;;  %s1227_s0 = inlined_call_operand.hbm [shape: f32[2,8,32], index: 0, kind: input, shape index: {}]   ;;  %s1228_s1 = inlined_call_operand.vmem [shape: f32[2,1,256], index: 1, kind: input, shape index: {}]   ;;  %s1229_s2 = inlined_call_operand.hbm [shape: f32[32,256], index: 2, kind: input, shape index: {}]   ;;  %s1230_s3 = inlined_call_operand.vmem [shape: f32[8,1], index: 3, kind: input, shape index: {}]   ;;  %s1231_s4 = inlined_call_operand.hbm [shape: f32[256,128], index: 4, kind: input, shape index: {}]   ;;  %s1232_s5 = inlined_call_operand.hbm [shape: f32[2,8,128], index: 5, kind: output, shape index: {}]  }
   0x1   :  { %12 = vsyncpa [#allocation3 + $0x1], 0 }
   0x2   :  { %13 = vsyncpa [#allocation6], 0 }
   0x3   :  { %14 = vsyncpa [#allocation4], 0 }
   0x4   :  { %16 = vsyncpa [#allocation4 + $0x1], 0  ;;  %s986_s18 = smov 0   ;;  %s988_s19 = smov 0  }
   0x5   :  { %s990_s20 = smov 0   ;;  %s992_s21 = smov 0  }
   0x6 LB: > { %s1007_s3 = sadd.s32 4294967295, %s945_s21   ;;  %s616_s22 = sadd.s32 4294967294, %s945_s21   ;;  %s945_s21 = sphi %s992_s21, %s1252_s21   ;;  %s941_s20 = sphi %s990_s20, %s1251_s20   ;;  %s937_s19 = sphi %s988_s19, %s1250_s19   ;;  %s933_s18 = sphi %s986_s18, %s1249_s18  }
   0x7   : > { %p42_p0 = scmp.ne.s32.totalorder %s937_s19, %s933_s18  ;;  %p1233_p1 = scmp.eq.s32.totalorder %s1007_s3, 0 }
   0x8   : > { %p161_p3 = scmp.eq.s32.totalorder %s616_s22, 1  ;;  %p617_p5 = scmp.ge.s32.totalorder %s945_s21, 1 }
   0x9   : > { %p1016_p4 = por %p1233_p1, %p42_p0  ;;  %p168_p7 = scmp.lt.s32.totalorder %s945_s21, 3 }
   0xa   : > { %p1021_p6 = por %p161_p3, %p42_p0  ;;  %s947_s26 = smov [#allocation5]  }
   0xb   : > { %s1236_s23 = scalar_select %p1016_p4, 1, 0 }
   0xc   : > { %s1237_s24 = scalar_select %p1021_p6, 1, 0 }
   0xd   : > { %p1026_p8 = pnand %p617_p5, %p168_p7  ;;  %s180_s27 = sshll.u32 %s947_s26, 4  ;;  %s1030_s27 = int_to_ptr.vmem [resolvable:$true] %s180_s27 }
   0xe   : > { %s948_s29 = smov [#allocation7]   ;;  %s789_s8 = scalar_lea.hbm %s1229_s2, 1024 }
   0xf   : > { %p721_p9 = pneg %p1026_p8  ;;  %s196_s30 = sshll.u32 %s948_s29, 4  ;;  %s1041_s30 = int_to_ptr.vmem [resolvable:$true] %s196_s30 }
  0x10   : > { %p790_p12 = scmp.ne.s32.totalorder %s1229_s2, %s789_s8  ;;  %p796_p5 = scmp.lt.u32.totalorder %s789_s8, %s1229_s2 }
  0x11   : > { %p1037_p11 = pnand %p721_p9, %p1233_p1 }
  0x13   : > { %p791_p13 = pneg %p1037_p11 }
  0x15   : > { %p792_p0 = pnand %p791_p13, %p790_p12 }
  0x17   : > { %p793_p3 = pneg %p792_p0 }
  0x19   : > { %p798_p7 = pnand %p796_p5, %p793_p3 }
  0x1b   : > { %801 = shalt.err (!%p798_p7)
}
  0x1c   : > { %s802_s13 = scalar_lea.vmem %s1030_s27, 1024  ;;  %p810_p2 = scmp.lt.s32.totalorder %s1030_s27, %s1030_s27 }
  0x1d   : > { %p803_p9 = scmp.ne.s32.totalorder %s1030_s27, %s802_s13  ;;  %p811_p12 = scmp.lt.s32.totalorder %s802_s13, %s802_s13 }
  0x1f   : > { %p805_p10 = pnand %p803_p9, %p791_p13  ;;  %p812_p0 = por %p811_p12, %p810_p2 }
  0x21   : > { %p806_p1 = pneg %p805_p10 }
  0x23   : > { %p813_p6 = pnand %p812_p0, %p806_p1 }
  0x25   : > { %816 = shalt.err (!%p813_p6)
}
  0x26   : > { %s949_s14 = smov 256   ;;  %s950_s15 = smov 16  }
  0x27   : > { %724 = dma.hbm_to_vmem [thread:$0]  (!%p1037_p11), %s1229_s2, 1024, %s1030_s27, [#allocation6], %s949_s14, %s949_s14, %s950_s15  }
  0x28   : > { %s817_s29 = scalar_lea.hbm %s1231_s4, 4096 }
  0x29   : > { %p818_p2 = scmp.ne.s32.totalorder %s1231_s4, %s817_s29  ;;  %p824_p10 = scmp.lt.u32.totalorder %s817_s29, %s1231_s4 }
  0x2b   : > { %p820_p1 = pnand %p818_p2, %p791_p13 }
  0x2d   : > { %p821_p6 = pneg %p820_p1 }
  0x2f   : > { %p826_p3 = pnand %p824_p10, %p821_p6 }
  0x31   : > { %829 = shalt.err (!%p826_p3)
}
  0x32   : > { %s830_s27 = scalar_lea.vmem %s1041_s30, 4096  ;;  %p838_p12 = scmp.lt.s32.totalorder %s1041_s30, %s1041_s30 }
  0x33   : > { %p831_p5 = scmp.ne.s32.totalorder %s1041_s30, %s830_s27  ;;  %p839_p0 = scmp.lt.s32.totalorder %s830_s27, %s830_s27 }
  0x35   : > { %p833_p7 = pnand %p831_p5, %p791_p13  ;;  %p840_p2 = por %p839_p0, %p838_p12 }
  0x37   : > { %p834_p9 = pneg %p833_p7 }
  0x39   : > { %p841_p1 = pnand %p840_p2, %p834_p9 }
  0x3b   : > { %844 = shalt.err (!%p841_p1)
}
  0x3c   : > { %s951_s10 = smov 128   ;;  %s952_s11 = smov 8  }
  0x3d   : > { %727 = dma.hbm_to_vmem [thread:$0]  (!%p1037_p11), %s1231_s4, 4096, %s1041_s30, [#allocation6], %s951_s10, %s951_s10, %s952_s11  }
  0x3e   : > { %s1096_s14 = sadd.s32 1, %s945_s21   ;;  %s29_s16 = sadd.s32 1, %s941_s20 }
  0x3f   : > { %s26_s15 = ssub.s32 %s945_s21, %s1096_s14  ;;  %p36_p6 = scmp.ne.s32.totalorder %s941_s20, %s937_s19 }
  0x40   : > { %p27_p13 = scmp.eq.s32.totalorder %s26_s15, 0  ;;  %p37_p10 = scmp.eq.s32.totalorder %s945_s21, 0 }
  0x41   : > { %p1240_p5 = scmp.eq.s32.totalorder %s1007_s3, 1  ;;  %p738_p9 = scmp.lt.s32.totalorder %s945_s21, 2 }
  0x42   : > { %s1105_s17 = scalar_select %p27_p13, %s941_s20, %s29_s16  }
  0x43   : > { %p38_p3 = por %p37_p10, %p36_p6  ;;  %p1109_p7 = por %p1240_p5, %p36_p6 }
  0x44   : > { %s210_s28 = sand.u32 1, %s941_s20   ;;  %s622_s30 = sshll.u32 %s945_s21, 7 }
  0x45   : > { %s1241_s22 = scalar_select %p1109_p7, 1, 0 }
  0x46   : > { %s621_s26 = sshll.u32 %s210_s28, 3  ;;  %s1119_s7 = scalar_lea.hbm %s1227_s0, %s622_s30 }
  0x47   : > { %s214_s8 = scalar_lea.vmem [#allocation2], %s621_s26  ;;  %p1123_p11 = pnand %p738_p9, %p38_p3 }
  0x48   : > { %s221_s9 = sshll.u32 %s214_s8, 4  ;;  %s211_s10 = scalar_lea.sflag [#allocation3], %s210_s28  ;;  %s1121_s9 = int_to_ptr.vmem [resolvable:$true] %s221_s9 }
  0x49   : > { %s845_s11 = scalar_lea.hbm %s1119_s7, 128  ;;  %p847_p0 = pneg %p1123_p11 }
  0x4a   : > { %p846_p12 = scmp.ne.s32.totalorder %s1119_s7, %s845_s11  ;;  %s850_s15 = scalar_lea.hbm %s1227_s0, 256 }
  0x4b   : > { %p851_p13 = scmp.lt.u32.totalorder %s1119_s7, %s1227_s0  ;;  %p852_p6 = scmp.lt.u32.totalorder %s850_s15, %s845_s11 }
  0x4c   : > { %p848_p2 = pnand %p847_p0, %p846_p12  ;;  %p854_p3 = scmp.lt.u32.totalorder %s845_s11, %s1119_s7 }
  0x4d   : > { %p853_p10 = por %p852_p6, %p851_p13 }
  0x4e   : > { %p849_p1 = pneg %p848_p2 }
  0x4f   : > { %p855_p5 = por %p854_p3, %p853_p10 }
  0x51   : > { %p856_p9 = pnand %p855_p5, %p849_p1 }
  0x53   : > { %859 = shalt.err (!%p856_p9)
}
  0x54   : > { %s860_s28 = scalar_lea.vmem %s1121_s9, 128  ;;  %s953_s30 = smov [#allocation2]  }
  0x55   : > { %p861_p12 = scmp.ne.s32.totalorder %s1121_s9, %s860_s28  ;;  %s865_s29 = sshll.u32 %s953_s30, 4  ;;  %s866_s29 = int_to_ptr.vmem [resolvable:$false] %s865_s29 }
  0x56   : > { %s867_s6 = scalar_lea.vmem %s866_s29, 256  ;;  %p868_p4 = scmp.lt.s32.totalorder %s1121_s9, %s866_s29 }
  0x57   : > { %p863_p2 = pnand %p861_p12, %p847_p0  ;;  %p869_p13 = scmp.lt.s32.totalorder %s867_s6, %s860_s28 }
  0x59   : > { %p864_p7 = pneg %p863_p2  ;;  %p870_p6 = por %p869_p13, %p868_p4 }
  0x5b   : > { %p871_p10 = pnand %p870_p6, %p864_p7 }
  0x5d   : > { %874 = shalt.err (!%p871_p10)
}
  0x5e   : > { %731 = dma.hbm_to_vmem [thread:$0]  (!%p1123_p11), %s1119_s7, 128, %s1121_s9, %s211_s10  }
  0x5f   : > { %237 = sbr.rel (%p1026_p8) target bundleno = 888 (0x378), region = 40  ;;  %s1155_s8 = sand.u32 (!%p1026_p8), 1, %s937_s19  }
  0x60   : > { %s624_s11 = sshll.u32 (!%p1026_p8), %s1155_s8, 3  ;;  %s240_s12 = scalar_lea.sflag (!%p1026_p8), [#allocation3], %s1155_s8 }
  0x61   : > { %s1161_s13 = scalar_lea.vmem (!%p1026_p8), [#allocation2], %s624_s11  ;;  %p1243_p4 = scmp.ne.s32.totalorder (!%p1026_p8), %s1236_s23, 0 }
  0x66   : > { %920 = dma.done.wait (%p1243_p4), %s240_s12, 128  }
  0x67   : > { %922 = vsyncadd (%p1243_p4), %s240_s12, 4294967168  ;;  %p1244_p7 = scmp.eq.s32.totalorder %s1007_s3, 0 }
  0x69   : > { %924 = dma.done.wait (%p1244_p7), [#allocation6], 5120   ;;  %p1245_p8 = pmov %p1244_p7 }
  0x6a   : > { %v954_v0 = vmov 0.0   ;;  %v289_v1 = vld [vmem:[#allocation5 + $0x8] sm:$0xff]  ;;  %v291_v2 = vld [vmem:[#allocation5 + $0x18] sm:$0xff]  ;;  %v288_v3 = vld [vmem:[#allocation5] sm:$0xff]  ;;  %vm307_vm0 = vcmask 261120   ;;  %p282_p11 = scmp.lt.s32.totalorder %s1007_s3, 1  ;;  %v297_v62 = vlaneseq }
  0x6b   : > { %926 = vsyncadd (%p1245_p8), [#allocation6], 4294962176  ;;  %375 = vmatprep.mubr.f32.mxu0 %v954_v0  ;;  %v669_v4 = vpack.c.bf16 %v291_v2, %v289_v1  ;;  %v290_v5 = vld [vmem:[#allocation5 + $0x10] sm:$0xff]  ;;  %v293_v6 = vld [vmem:[#allocation5 + $0x28] sm:$0xff]  ;;  %s631_s10 = sshll.u32 %s1007_s3, 7  ;;  %s281_s15 = scalar_lea.vmem [#allocation8], %s624_s11 }
  0x6c   : > { %v295_v7 = vld [vmem:[#allocation5 + $0x38] sm:$0xff]  ;;  %v671_v8 = vpack.c.bf16 %v290_v5, %v288_v3  ;;  %v292_v10 = vld [vmem:[#allocation5 + $0x20] sm:$0xff]  ;;  %v294_v11 = vld [vmem:[#allocation5 + $0x30] sm:$0xff]  ;;  %s283_s23 = scalar_select %p282_p11, %s1007_s3, 1  ;;  %v298_v63 = vshrl.u32 %v297_v62, 7 }
  0x6d   : > { %v673_v9 = vpack.c.bf16 %v295_v7, %v293_v6  ;;  %670 = vmatprep.subr.bf16.mxu0 %v669_v4  ;;  %v400_v12 = vld [vmem:[#allocation7 + $0x80] sm:$0xff]  ;;  %v401_v13 = vld [vmem:[#allocation7 + $0x88] sm:$0xff]  ;;  %v675_v15 = vpack.c.bf16 %v294_v11, %v292_v10  ;;  %v402_v18 = vld [vmem:[#allocation7 + $0x90] sm:$0xff]  ;;  %v487_v11 = vand.u32 127, %v297_v62  ;;  %s515_s16 = sshll.u32 %s281_s15, 4  ;;  %s1183_s30 = scalar_lea.hbm %s1232_s5, %s631_s10  ;;  %s1185_s16 = int_to_ptr.vmem [resolvable:$true] %s515_s16 }
  0x6e   : > { %v384_v14 = vld [vmem:[#allocation7] sm:$0xff]  ;;  %672 = vmatpush1.bf16.msra.mxu0 %v671_v8  ;;  %v677_v16 = vpack.c.bf16 %v401_v13, %v400_v12  ;;  %v385_v17 = vld [vmem:[#allocation7 + $0x8] sm:$0xff]  ;;  %v403_v19 = vld [vmem:[#allocation7 + $0x98] sm:$0xff]  ;;  %s628_s25 = sshll.u32 %s283_s23, 1  ;;  %v299_v0 = vsub.s32 0, %v298_v63  ;;  %v303_v2 = vsub.s32 1, %v298_v63 }
  0x6f   : > { %674 = vmatprep.subr.bf16.mxu0 %v673_v9  ;;  %v679_v20 = vpack.c.bf16 %v385_v17, %v384_v14  ;;  %v681_v21 = vpack.c.bf16 %v403_v19, %v402_v18  ;;  %v386_v22 = vld [vmem:[#allocation7 + $0x10] sm:$0xff]  ;;  %v387_v23 = vld [vmem:[#allocation7 + $0x18] sm:$0xff]  ;;  %v404_v24 = vld [vmem:[#allocation7 + $0xa0] sm:$0xff]  ;;  %s285_s27 = scalar_lea.vmem %s1228_s1, %s628_s25  ;;  %vm488_vm1 = vcmp.lt.s32.totalorder %v487_v11, 8  ;;  %s502_s29 = scalar_lea.sflag [#allocation4], %s1155_s8 }
  0x70   : > { %678 = vmatprep.subr.bf16.mxu1 %v677_v16  ;;  %v405_v25 = vld [vmem:[#allocation7 + $0xa8] sm:$0xff]  ;;  %v683_v26 = vpack.c.bf16 %v387_v23, %v386_v22  ;;  %v286_v27 = vld [vmem:[%s1161_s13] sm:$0xff]  ;;  %v388_v29 = vld [vmem:[#allocation7 + $0x20] sm:$0xff]  ;;  %s875_s6 = scalar_lea.vmem %s1185_s16, 128  ;;  %p1246_p1 = scmp.ne.s32.totalorder %s1241_s22, 0 }
  0x71   : > { %680 = vmatpush3.bf16.msra.mxu1 %v679_v20  ;;  %v685_v28 = vpack.c.bf16 %v405_v25, %v404_v24  ;;  %v389_v30 = vld [vmem:[#allocation7 + $0x28] sm:$0xff]  ;;  %v406_v31 = vld [vmem:[#allocation7 + $0xb0] sm:$0xff]  ;;  %v407_v32 = vld [vmem:[#allocation7 + $0xb8] sm:$0xff]  ;;  %p876_p0 = scmp.ne.s32.totalorder %s1185_s16, %s875_s6  ;;  %s955_s3 = smov [#allocation8]  }
  0x72   : > { %676 = vmatpush1.bf16.msra.mxu0 %v675_v15  ;;  %682 = vmatprep.subr.bf16.mxu1 %v681_v21  ;;  %v687_v33 = vpack.c.bf16 %v389_v30, %v388_v29  ;;  %v689_v34 = vpack.c.bf16 %v407_v32, %v406_v31  ;;  %v390_v35 = vld [vmem:[#allocation7 + $0x30] sm:$0xff]  ;;  %v391_v36 = vld [vmem:[#allocation7 + $0x38] sm:$0xff]  ;;  %v408_v38 = vld [vmem:[#allocation7 + $0xc0] sm:$0xff]  ;;  %s879_s11 = sshll.u32 %s955_s3, 4  ;;  %s880_s11 = int_to_ptr.vmem [resolvable:$false] %s879_s11 }
  0x73   : > { %v691_v37 = vpack.c.bf16 %v391_v36, %v390_v35  ;;  %v409_v39 = vld [vmem:[#allocation7 + $0xc8] sm:$0xff]  ;;  %v392_v41 = vld [vmem:[#allocation7 + $0x40] sm:$0xff]  ;;  %v410_v44 = vld [vmem:[#allocation7 + $0xd0] sm:$0xff]  ;;  %p877_p3 = pnand %p876_p0, %p1246_p1  ;;  %s881_s12 = scalar_lea.vmem %s880_s11, 256 }
  0x74   : > { %v693_v40 = vpack.c.bf16 %v409_v39, %v408_v38  ;;  %v393_v42 = vld [vmem:[#allocation7 + $0x48] sm:$0xff]  ;;  %v411_v45 = vld [vmem:[#allocation7 + $0xd8] sm:$0xff]  ;;  %v394_v47 = vld [vmem:[#allocation7 + $0x50] sm:$0xff]  ;;  %p882_p9 = scmp.lt.s32.totalorder %s1185_s16, %s880_s11  ;;  %p883_p12 = scmp.lt.s32.totalorder %s881_s12, %s875_s6 }
  0x75   : > { %629 = vmatmul.mubr.msk.f32.vlgmr.msra.gmra.mrb[0].mxu0 %vm307_vm0, %v286_v27  ;;  %684 = vmatpush3.bf16.msra.mxu1 %v683_v26  ;;  %v695_v43 = vpack.c.bf16 %v393_v42, %v392_v41  ;;  %v697_v46 = vpack.c.bf16 %v411_v45, %v410_v44  ;;  %v395_v48 = vld [vmem:[#allocation7 + $0x58] sm:$0xff]  ;;  %v412_v50 = vld [vmem:[#allocation7 + $0xe0] sm:$0xff]  ;;  %v413_v51 = vld [vmem:[#allocation7 + $0xe8] sm:$0xff]  ;;  %p878_p5 = pneg %p877_p3 }
  0x76   : > { %686 = vmatprep.subr.bf16.mxu1 %v685_v28  ;;  %v699_v49 = vpack.c.bf16 %v395_v48, %v394_v47  ;;  %v396_v52 = vld [vmem:[#allocation7 + $0x60] sm:$0xff]  ;;  %v701_v53 = vpack.c.bf16 %v413_v51, %v412_v50  ;;  %v397_v54 = vld [vmem:[#allocation7 + $0x68] sm:$0xff]  ;;  %v414_v55 = vld [vmem:[#allocation7 + $0xf0] sm:$0xff]  ;;  %p884_p2 = por %p883_p12, %p882_p9 }
  0x77   : > { %v415_v56 = vld [vmem:[#allocation7 + $0xf8] sm:$0xff]  ;;  %v703_v57 = vpack.c.bf16 %v397_v54, %v396_v52  ;;  %v398_v59 = vld [vmem:[#allocation7 + $0x70] sm:$0xff] }
  0x78   : > { %v705_v58 = vpack.c.bf16 %v415_v56, %v414_v55  ;;  %v399_v60 = vld [vmem:[#allocation7 + $0x78] sm:$0xff]  ;;  %v287_v1 = vld [vmem:[%s285_s27] sm:$0x3]  ;;  %p885_p13 = pnand %p884_p2, %p878_p5 }
  0x79   : > { %688 = vmatpush3.bf16.msra.mxu1 %v687_v33  ;;  %v707_v61 = vpack.c.bf16 %v399_v60, %v398_v59  ;;  %v300_v3 = vrot.slane %v287_v1, %v299_v0  ;;  %v304_v4 = vrot.slane %v287_v1, %v303_v2 }
  0x7a   : > { %690 = vmatprep.subr.bf16.mxu1 %v689_v34 }
  0x7d   : > { %692 = vmatpush3.bf16.msra.mxu1 %v691_v37 }
  0x7e   : > { %694 = vmatprep.subr.bf16.mxu1 %v693_v40 }
  0x81   : > { %696 = vmatpush3.bf16.msra.mxu1 %v695_v43 }
  0x82   : > { %698 = vmatprep.subr.bf16.mxu1 %v697_v46 }
  0x85   : > { %700 = vmatpush3.bf16.msra.mxu1 %v699_v49 }
  0x86   : > { %702 = vmatprep.subr.bf16.mxu1 %v701_v53 }
  0x89   : > { %704 = vmatpush3.bf16.msra.mxu1 %v703_v57 }
  0x8a   : > { %706 = vmatprep.subr.bf16.mxu1 %v705_v58 }
  0x8d   : > { %708 = vmatpush3.bf16.msra.mxu1 %v707_v61 }
 0x148   : > { %v377_v5 = vpop.f32.mrb[0].mxu0 }
 0x149   : > { %v378_v6 = vadd.f32 %v377_v5, %v300_v3  ;;  %v379_v7 = vpop.f32.mrb[1].mxu0 }
 0x14a   : > { %v380_v8 = vadd.f32 %v379_v7, %v304_v4 }
 0x14c   : > { %781 = vtanh.f32 %v380_v8 }
 0x14d   : > { %783 = vtanh.f32 %v378_v6 }
 0x156   : > { %v782_v9 = vpop.eup %781 }
 0x157   : > { %v784_v10 = vpop.eup %783  ;;  %480 = vmatprep.mubr.f32.mxu1 %v782_v9 }
 0x158   : > { %481 = vmatmul.mubr.f32.vlgmr.msra.gmra.mrb[0].mxu1 %v784_v10 }
 0x22b   : > { %v666_v12 = vpop.f32.mrb[0].mxu1 }
 0x22c   : > { %v667_v13 = vpop.f32.mrb[1].mxu1 }
 0x22d   : > { %v668_v14 = vadd.f32 %v667_v13, %v666_v12 }
 0x22f   : > { %v489_v15 = vsel %vm488_vm1, %v668_v14, -1e+30 }
 0x230   : > { %490 = vmax.xlane.f32.xlu0 %v489_v15 }
 0x2bd   : > { %v491_v16 = vpop.xlane.xlu0 %490 }
 0x2be   : > { %v492_v17 = vsub.f32 %v489_v15, %v491_v16 }
 0x2c0   : > { %v493_v18 = vmul.f32 1.442695, %v492_v17 }
 0x2c2   : > { %785 = vpow2.f32 %v493_v18 }
 0x2cc   : > { %v786_v19 = vpop.eup %785 }
 0x2cd   : > { %495 = vadd.xlane.f32.xlu0 %v786_v19 }
 0x35a   : > { %v496_v20 = vpop.xlane.xlu0 %495 }
 0x35b   : > { %787 = vlog2.f32 %v496_v20 }
 0x365   : > { %v788_v21 = vpop.eup %787 }
 0x366   : > { %v498_v22 = vmul.f32 0.6931472, %v788_v21 }
 0x368   : > { %v499_v23 = vsub.f32 %v492_v17, %v498_v22 }
 0x36a   : > { %500 = vst [vmem:[%s281_s15] sm:$0xff] %v499_v23 }
 0x36b   : > { %888 = shalt.err (!%p885_p13)
}
 0x36c   : > { %s889_s8 = scalar_lea.hbm %s1183_s30, 128  ;;  %s893_s25 = scalar_lea.hbm %s1232_s5, 256 }
 0x36d   : > { %p890_p6 = scmp.ne.s32.totalorder %s1183_s30, %s889_s8  ;;  %p894_p7 = scmp.lt.u32.totalorder %s1183_s30, %s1232_s5 }
 0x36e   : > { %p895_p8 = scmp.lt.u32.totalorder %s893_s25, %s889_s8  ;;  %p897_p0 = scmp.lt.u32.totalorder %s889_s8, %s1183_s30 }
 0x36f   : > { %p891_p10 = pnand %p890_p6, %p1246_p1 }
 0x370   : > { %p896_p11 = por %p895_p8, %p894_p7 }
 0x371   : > { %p892_p4 = pneg %p891_p10 }
 0x372   : > { %p898_p3 = por %p897_p0, %p896_p11 }
 0x374   : > { %p899_p5 = pnand %p898_p3, %p892_p4 }
 0x376   : > { %902 = shalt.err (!%p899_p5)
}
 0x377   : > { %719 = dma.vmem_to_hbm [thread:$0]  (%p1246_p1), %s1185_s16, 128, %s1183_s30, %s502_s29  }
 0x378 PF: > { %s527_s27 = sand.u32 1, %s933_s18   ;;  %p1247_p9 = scmp.ne.s32.totalorder %s1237_s24, 0 }
 0x379   : > { %p1248_p12 = scmp.ge.s32.totalorder %s945_s21, 2  ;;  %s528_s10 = scalar_lea.sflag [#allocation4], %s527_s27 }
 0x37b   : > { %p733_p2 = pnand %p1248_p12, %p1247_p9 }
 0x37d   : > { %928 = dma.done.wait (!%p733_p2), %s528_s10, 128  }
 0x37e   : > { %930 = vsyncadd (!%p733_p2), %s528_s10, 4294967168  ;;  %p19_p13 = scmp.ge.s32.totalorder %s1096_s14, 4   ;;  %s1249_s18 = smov %s937_s19 }
 0x37f   : > { %s1250_s19 = smov %s941_s20  ;;  %s1251_s20 = smov %s1105_s17 }
 0x380   : > { %s1252_s21 = smov %s1096_s14  ;;  %21 = sbr.rel (!%p19_p13) target bundleno = 6 (0x6), region = 96 }
 0x387   :  { %533 = vsyncpa [#allocation3], 1 }
 0x388   :  { %535 = vsyncpa [#allocation3 + $0x1], 1 }
 0x389   :  { %536 = vsyncpa [#allocation6], 1 }
 0x38a   :  { %537 = vsyncpa [#allocation4], 1 }
 0x38b   :  { %539 = vsyncpa [#allocation4 + $0x1], 1 }

</bundles_post_ra>
